<compile_context>
chip_gen: v7x
topology: tpu7x:2x2x1
jax: 0.10.0
libtpu: 0.0.40
codegen_flags: <defaults>
</compile_context>

<pallas_src>
import functools

import jax
import jax.numpy as jnp
from jax import lax
from jax.experimental import pallas as pl
from jax.experimental.pallas import tpu as pltpu

# Cap on unrolled lane-fold slices per grid step (bounds trace/code size).
_MAX_FOLD = 64
# ~4 MiB per input block: 2x (double buffer) + two (tile_c,128) f32 accumulators
# stays under v5e's 16 MiB default scoped VMEM; v6e/v7x have 32 MiB headroom.
_DEF_BLOCK_BYTES = 4 * 1024 * 1024


def _accumulate(x_ref, max_acc, sum_acc, slices, acc_w, rem):
    """Fold the (tile_c, tile_hw) block into the (tile_c, acc_w) accumulators.

    `slices` is a static list of (offset, width) lane windows covering the
    block.  `rem` is None for a full tile, or the number of valid lanes for the
    (single) ragged last tile; fully padded slices are skipped entirely.
    The running fold values m/s stay in vregs, so the accumulator RMW happens
    once per step on a 128-lane-wide array instead of once per input vreg.
    """
    m = s = None
    for off, width in slices:
        if rem is not None and off >= rem:
            break  # remaining slices are entirely padding
        xj = x_ref[:, off:off + width].astype(jnp.float32)
        if rem is not None and off + width > rem:
            lane = lax.broadcasted_iota(jnp.int32, xj.shape, 1)
            valid = lane < (rem - off)
            xm = jnp.where(valid, xj, -jnp.inf)
            xs = jnp.where(valid, xj, 0.0)
        else:
            xm = xs = xj
        if width == acc_w:
            if m is None:
                m, s = xm, xs
            else:
                m = jnp.maximum(m, xm)
                s = s + xs
        else:
            # Ragged-width tail slice (width < acc_w): fold it straight into the
            # matching accumulator lanes (one small masked store per step).
            max_acc[:, :width] = jnp.maximum(max_acc[:, :width], xm)
            sum_acc[:, :width] = sum_acc[:, :width] + xs
    if m is not None:
        max_acc[...] = jnp.maximum(max_acc[...], m)
        sum_acc[...] = sum_acc[...] + s


def _concat_pool_kernel(x_ref, out_ref, max_acc, sum_acc, *,
                        slices, acc_w, last_rem, last_tile, tiles_per_split):
    # x_ref:   (tile_c, tile_hw) input tile (leading N dim squeezed)
    # out_ref: (2, tile_c)       row 0 = partial max, row 1 = partial sum (f32)
    # max_acc, sum_acc: (tile_c, acc_w) f32 running accumulators in VMEM
    hi = pl.program_id(3)

    @pl.when(hi == 0)
    def _init():
        max_acc[...] = jnp.full(max_acc.shape, -jnp.inf, dtype=max_acc.dtype)
        sum_acc[...] = jnp.zeros(sum_acc.shape, dtype=sum_acc.dtype)

    if last_rem == 0:
        # No ragged tile anywhere: pure load + max/add on every step.
        _accumulate(x_ref, max_acc, sum_acc, slices, acc_w, None)
    else:
        # Only the globally-last HW tile needs masking; gate it so the steady
        # state stays unmasked. (Handles tiles_per_split == 1 too: the same
        # step is init + masked accumulate + finalize.)
        g = pl.program_id(2) * tiles_per_split + hi

        @pl.when(g < last_tile)
        def _steady():
            _accumulate(x_ref, max_acc, sum_acc, slices, acc_w, None)

        @pl.when(g == last_tile)
        def _ragged():
            _accumulate(x_ref, max_acc, sum_acc, slices, acc_w, last_rem)

    @pl.when(hi == tiles_per_split - 1)
    def _finalize():
        # Single narrow cross-lane (XLU) reduce per (n, c-tile, split).
        out_ref[0, :] = jnp.max(max_acc[...], axis=-1).astype(out_ref.dtype)
        out_ref[1, :] = jnp.sum(sum_acc[...], axis=-1).astype(out_ref.dtype)


def _choose_tiles(c, hw, itemsize, max_block_bytes):
    """Pick (tile_c, tile_hw) targeting ~max_block_bytes per input block."""
    budget = max(max_block_bytes // itemsize, 8 * 128)   # elements per block
    # 1) Whole (C, HW) plane fits in one block: largest possible tile.
    if c * hw <= budget:
        return c, hw
    if c % 128 == 0 and c > 128:
        # 2) Channel-tiled with full spatial rows (long contiguous DMA rows),
        #    if at least 128 channels fit alongside a whole HW row.
        tc_cap = (budget // hw) // 128
        if tc_cap >= 1:
            q = c // 128
            m = tc_cap
            while q % m:          # largest m | (c/128) with m <= tc_cap
                m -= 1
            return 128 * m, hw
        tile_c = 128              # 3) stream HW with 128-channel tiles
    else:
        # C not 128-divisible: the output lane dim forces full C per tile.
        tile_c = c
    tile_hw = max(budget // tile_c, 128) // 128 * 128
    tile_hw = min(tile_hw, pl.cdiv(hw, 128) * 128)
    return tile_c, tile_hw


def adaptive_concat_pool2d(x, *, max_block_bytes=_DEF_BLOCK_BYTES):
    """AdaptiveConcatPool2d((1,1)): (N, C, H, W) -> (N, 2C, 1, 1).

    Channels 0..C-1 hold the global max, C..2C-1 the global mean, matching
    torch.cat([AdaptiveMaxPool2d(1)(x), AdaptiveAvgPool2d(1)(x)], dim=1).
    """
    n, c, h, w = x.shape
    hw = h * w
    if not jnp.issubdtype(x.dtype, jnp.floating):
        # -inf init / mean need float math; pool integer inputs in f32.
        x = x.astype(jnp.float32)
    out_dtype = x.dtype
    itemsize = x.dtype.itemsize

    # Free reshape (no transpose): spatial plane flattened onto the lane axis.
    x_flat = x.reshape(n, c, hw)

    # --- tile sizing (byte-budgeted) ---------------------------------------
    tile_c, tile_hw = _choose_tiles(c, hw, itemsize, max_block_bytes)
    c_tiles = pl.cdiv(c, tile_c)          # exact: tile_c divides c or == c
    n_hw_total = pl.cdiv(hw, tile_hw)
    last_rem = hw - (n_hw_total - 1) * tile_hw
    if last_rem == tile_hw:
        last_rem = 0                      # no ragged last tile

    # Split the HW walk in two (extra parallel axis) when there is otherwise a
    # single (batch, channel-tile) unit of work, so both v7x TensorCores run.
    # Only done for an even tile count so the split needs no empty-tile logic;
    # harmless on single-core v5e/v6e.
    if n * c_tiles == 1 and n_hw_total >= 2 and n_hw_total % 2 == 0:
        num_splits = 2
    else:
        num_splits = 1
    tiles_per_split = n_hw_total // num_splits

    # --- lane-fold plan ------------------------------------------------------
    acc_w = 128 * max(1, pl.cdiv(tile_hw, 128 * _MAX_FOLD))
    n_full = tile_hw // acc_w
    tail = tile_hw - n_full * acc_w
    slices = tuple((j * acc_w, acc_w) for j in range(n_full))
    if tail:
        slices = slices + ((n_full * acc_w, tail),)

    kernel = functools.partial(
        _concat_pool_kernel,
        slices=slices, acc_w=acc_w, last_rem=last_rem,
        last_tile=n_hw_total - 1, tiles_per_split=tiles_per_split)

    grid = (n, c_tiles, num_splits, tiles_per_split)

    out = pl.pallas_call(
        kernel,
        out_shape=jax.ShapeDtypeStruct((n, num_splits, 2, c), jnp.float32),
        grid_spec=pltpu.PrefetchScalarGridSpec(
            num_scalar_prefetch=0,
            grid=grid,
            in_specs=[
                pl.BlockSpec(
                    (pl.Squeezed(), tile_c, tile_hw),
                    lambda ni, ci, si, hi: (ni, ci, si * tiles_per_split + hi)),
            ],
            out_specs=pl.BlockSpec(
                (pl.Squeezed(), pl.Squeezed(), 2, tile_c),
                lambda ni, ci, si, hi: (ni, si, 0, ci)),
            scratch_shapes=[
                pltpu.VMEM((tile_c, acc_w), jnp.float32),   # running max
                pltpu.VMEM((tile_c, acc_w), jnp.float32),   # running sum
            ],
        ),
        compiler_params=pltpu.CompilerParams(
            dimension_semantics=("parallel", "parallel", "parallel",
                                 "arbitrary"),
        ),
        cost_estimate=pl.CostEstimate(
            flops=2 * n * c * hw,
            transcendentals=0,
            bytes_accessed=n * c * hw * itemsize + n * num_splits * 2 * c * 4),
    )(x_flat)

    # Tiny epilogue: combine split partials, apply 1/HW in f32, lay out as
    # [max channels..., avg channels...] to match torch.cat ordering.
    pooled_max = jnp.max(out[:, :, 0, :], axis=1)                 # (N, C)
    pooled_mean = jnp.sum(out[:, :, 1, :], axis=1) * (1.0 / hw)    # (N, C)
    res = jnp.concatenate([pooled_max, pooled_mean], axis=1).astype(out_dtype)
    return res.reshape(n, 2 * c, 1, 1)


def _reference(x):
    x = x.astype(jnp.float32) if not jnp.issubdtype(x.dtype, jnp.floating) else x
    ref_max = jnp.max(x, axis=(2, 3), keepdims=True)
    ref_avg = jnp.mean(x, axis=(2, 3), keepdims=True)
    return jnp.concatenate([ref_max, ref_avg], axis=1)


if __name__ == "__main__":
    key = jax.random.PRNGKey(0)
    keys = jax.random.split(key, 5)

    # 1) Primary small test (matches the module's expected NCHW input).
    x = jax.random.normal(keys[0], (2, 4, 16, 16), dtype=jnp.float32)
    out = jax.block_until_ready(adaptive_concat_pool2d(x))
    assert out.shape == (2, 8, 1, 1), out.shape
    assert jnp.allclose(out, _reference(x), atol=1e-5, rtol=1e-5)

    # 2) Streaming HW path + ragged last tile (mask gated to last step).
    x2 = jax.random.normal(keys[1], (2, 8, 18, 18), dtype=jnp.float32)  # HW=324
    out2 = jax.block_until_ready(
        adaptive_concat_pool2d(x2, max_block_bytes=8 * 1024))
    assert out2.shape == (2, 16, 1, 1), out2.shape
    assert jnp.allclose(out2, _reference(x2), atol=1e-5, rtol=1e-5)

    # 3) Single (N x C-tile) unit of work -> 2-way HW split (megacore path).
    x3 = jax.random.normal(keys[2], (1, 8, 32, 32), dtype=jnp.float32)  # HW=1024
    out3 = jax.block_until_ready(
        adaptive_concat_pool2d(x3, max_block_bytes=8 * 1024))
    assert out3.shape == (1, 16, 1, 1), out3.shape
    assert jnp.allclose(out3, _reference(x3), atol=1e-5, rtol=1e-5)

    # 4) Small-HW tile (< 128 lanes): tail-only accumulate path.
    x4 = jax.random.normal(keys[3], (1, 256, 8, 8), dtype=jnp.float32)
    out4 = jax.block_until_ready(adaptive_concat_pool2d(x4))
    assert out4.shape == (1, 512, 1, 1), out4.shape
    assert jnp.allclose(out4, _reference(x4), atol=1e-5, rtol=1e-5)

    # 5) Channel-tiled path with full spatial rows (C multiple of 128).
    x5 = jax.random.normal(keys[4], (1, 384, 16, 16), dtype=jnp.float32)
    out5 = jax.block_until_ready(
        adaptive_concat_pool2d(x5, max_block_bytes=128 * 1024))
    assert out5.shape == (1, 768, 1, 1), out5.shape
    assert jnp.allclose(out5, _reference(x5), atol=1e-5, rtol=1e-5)

    print("KERNEL_OK")
</pallas_src>

<mosaic_0001>
module attributes {stable_mosaic.version = 11 : i64} {
  func.func @_concat_pool_kernel(%arg0: i32, %arg1: i32, %arg2: i32, %arg3: i32, %arg4: memref<1x4x256xf32, #tpu.memory_space<vmem>>, %arg5: memref<1x1x2x4xf32, #tpu.memory_space<vmem>>, %arg6: memref<4x128xf32, #tpu.memory_space<vmem>>, %arg7: memref<4x128xf32, #tpu.memory_space<vmem>>) attributes {dimension_semantics = [#tpu.dimension_semantics<parallel>, #tpu.dimension_semantics<parallel>, #tpu.dimension_semantics<parallel>, #tpu.dimension_semantics<arbitrary>], iteration_bounds = array<i64: 2, 1, 1, 1>, scalar_prefetch = 0 : i64, scratch_operands = 2 : i64, tpu.core_type = #tpu.core_type<tc>, window_params = [{transform_indices = @transform_0, window_bounds = array<i64: 1, 4, 256>}, {transform_indices = @transform_1, window_bounds = array<i64: 1, 1, 2, 4>}]} {
    %c0_i32 = arith.constant 0 : i32
    %0 = arith.cmpi eq, %arg3, %c0_i32 : i32
    %1 = arith.extui %0 : i1 to i32
    %c0_i32_0 = arith.constant 0 : i32
    %2 = arith.cmpi ne, %1, %c0_i32_0 : i32
    scf.if %2 {
      %cst = arith.constant 0xFF800000 : f32
      %18 = vector.broadcast %cst : f32 to vector<4x128xf32>
      %c0_15 = arith.constant 0 : index
      %c0_16 = arith.constant 0 : index
      %19 = vector.load %arg6[%c0_15, %c0_16] : memref<4x128xf32, #tpu.memory_space<vmem>>, vector<4x128xf32>
      tpu.vector_store %arg6[%c0_15, %c0_16], %18 {strides = array<i32>} : memref<4x128xf32, #tpu.memory_space<vmem>>, vector<4x128xf32>,
      %cst_17 = arith.constant 0.000000e+00 : f32
      %20 = vector.broadcast %cst_17 : f32 to vector<4x128xf32>
      %c0_18 = arith.constant 0 : index
      %c0_19 = arith.constant 0 : index
      %21 = vector.load %arg7[%c0_18, %c0_19] : memref<4x128xf32, #tpu.memory_space<vmem>>, vector<4x128xf32>
      tpu.vector_store %arg7[%c0_18, %c0_19], %20 {strides = array<i32>} : memref<4x128xf32, #tpu.memory_space<vmem>>, vector<4x128xf32>,
    } else {
    }
    %c0 = arith.constant 0 : index
    %c0_1 = arith.constant 0 : index
    %c0_2 = arith.constant 0 : index
    %3 = vector.load %arg4[%c0, %c0_1, %c0_2] : memref<1x4x256xf32, #tpu.memory_space<vmem>>, vector<1x4x128xf32>
    %4 = vector.shape_cast %3 : vector<1x4x128xf32> to vector<4x128xf32>
    %c0_3 = arith.constant 0 : index
    %c0_4 = arith.constant 0 : index
    %c128 = arith.constant 128 : index
    %5 = vector.load %arg4[%c0_3, %c0_4, %c128] : memref<1x4x256xf32, #tpu.memory_space<vmem>>, vector<1x4x128xf32>
    %6 = vector.shape_cast %5 : vector<1x4x128xf32> to vector<4x128xf32>
    %7 = arith.maximumf %4, %6 : vector<4x128xf32>
    %8 = arith.addf %4, %6 : vector<4x128xf32>
    %c0_5 = arith.constant 0 : index
    %c0_6 = arith.constant 0 : index
    %9 = vector.load %arg6[%c0_5, %c0_6] : memref<4x128xf32, #tpu.memory_space<vmem>>, vector<4x128xf32>
    %10 = arith.maximumf %9, %7 : vector<4x128xf32>
    %c0_7 = arith.constant 0 : index
    %c0_8 = arith.constant 0 : index
    %11 = vector.load %arg6[%c0_7, %c0_8] : memref<4x128xf32, #tpu.memory_space<vmem>>, vector<4x128xf32>
    tpu.vector_store %arg6[%c0_7, %c0_8], %10 {strides = array<i32>} : memref<4x128xf32, #tpu.memory_space<vmem>>, vector<4x128xf32>,
    %c0_9 = arith.constant 0 : index
    %c0_10 = arith.constant 0 : index
    %12 = vector.load %arg7[%c0_9, %c0_10] : memref<4x128xf32, #tpu.memory_space<vmem>>, vector<4x128xf32>
    %13 = arith.addf %12, %8 : vector<4x128xf32>
    %c0_11 = arith.constant 0 : index
    %c0_12 = arith.constant 0 : index
    %14 = vector.load %arg7[%c0_11, %c0_12] : memref<4x128xf32, #tpu.memory_space<vmem>>, vector<4x128xf32>
    tpu.vector_store %arg7[%c0_11, %c0_12], %13 {strides = array<i32>} : memref<4x128xf32, #tpu.memory_space<vmem>>, vector<4x128xf32>,
    %c0_i32_13 = arith.constant 0 : i32
    %15 = arith.cmpi eq, %arg3, %c0_i32_13 : i32
    %16 = arith.extui %15 : i1 to i32
    %c0_i32_14 = arith.constant 0 : i32
    %17 = arith.cmpi ne, %16, %c0_i32_14 : i32
    scf.if %17 {
      %c0_15 = arith.constant 0 : index
      %c0_16 = arith.constant 0 : index
      %18 = vector.load %arg6[%c0_15, %c0_16] : memref<4x128xf32, #tpu.memory_space<vmem>>, vector<4x128xf32>
      %cst = arith.constant dense<0xFF800000> : vector<4xf32>
      %19 = vector.multi_reduction <maximumf>, %18, %cst [1] : vector<4x128xf32> to vector<4xf32>
      %c0_17 = arith.constant 0 : index
      %c0_18 = arith.constant 0 : index
      %c0_19 = arith.constant 0 : index
      %c0_20 = arith.constant 0 : index
      %20 = vector.load %arg5[%c0_17, %c0_18, %c0_19, %c0_20] : memref<1x1x2x4xf32, #tpu.memory_space<vmem>>, vector<1x1x1x4xf32>
      %21 = vector.shape_cast %20 : vector<1x1x1x4xf32> to vector<4xf32>
      %22 = vector.shape_cast %19 : vector<4xf32> to vector<1x1x1x4xf32>
      tpu.vector_store %arg5[%c0_17, %c0_18, %c0_19, %c0_20], %22 {strides = array<i32>} : memref<1x1x2x4xf32, #tpu.memory_space<vmem>>, vector<1x1x1x4xf32>,
      %c0_21 = arith.constant 0 : index
      %c0_22 = arith.constant 0 : index
      %23 = vector.load %arg7[%c0_21, %c0_22] : memref<4x128xf32, #tpu.memory_space<vmem>>, vector<4x128xf32>
      %cst_23 = arith.constant dense<0.000000e+00> : vector<4xf32>
      %24 = vector.multi_reduction <add>, %23, %cst_23 [1] : vector<4x128xf32> to vector<4xf32>
      %c0_24 = arith.constant 0 : index
      %c0_25 = arith.constant 0 : index
      %c1 = arith.constant 1 : index
      %c0_26 = arith.constant 0 : index
      %25 = vector.load %arg5[%c0_24, %c0_25, %c1, %c0_26] : memref<1x1x2x4xf32, #tpu.memory_space<vmem>>, vector<1x1x1x4xf32>
      %26 = vector.shape_cast %25 : vector<1x1x1x4xf32> to vector<4xf32>
      %27 = vector.shape_cast %24 : vector<4xf32> to vector<1x1x1x4xf32>
      tpu.vector_store %arg5[%c0_24, %c0_25, %c1, %c0_26], %27 {strides = array<i32>} : memref<1x1x2x4xf32, #tpu.memory_space<vmem>>, vector<1x1x1x4xf32>,
    } else {
    }
    return
  }
  func.func @transform_0(%arg0: i32, %arg1: i32, %arg2: i32, %arg3: i32) -> (i32, i32, i32) {
    %c1_i32 = arith.constant 1 : i32
    %0 = arith.muli %arg2, %c1_i32 : i32
    %1 = arith.addi %0, %arg3 : i32
    %c0_i32 = arith.constant 0 : i32
    return %arg0, %arg1, %1 : i32, i32, i32
  }
  func.func @transform_1(%arg0: i32, %arg1: i32, %arg2: i32, %arg3: i32) -> (i32, i32, i32, i32) {
    %c0_i32 = arith.constant 0 : i32
    %c0_i32_0 = arith.constant 0 : i32
    return %arg0, %arg2, %c0_i32, %arg1 : i32, i32, i32, i32
  }
}

</mosaic_0001>

<bundles_post_ra>
// kernel: tpu_custom_call.1
= control target key start
LH: loop header
LB: loop body
LE: loop exit
PB: predicated region body
PF: predicated region fallthrough
CT: control target
= control target key end

     0   :  { %6 = vsyncpa [#allocation5], 0  ;;  %s709_s0 = inlined_call_operand.hbm [shape: f32[2,4,256], index: 0, kind: input, shape index: {}]   ;;  %s710_s1 = inlined_call_operand.hbm [shape: f32[2,1,2,4], index: 1, kind: output, shape index: {}]  }
   0x1   :  { %8 = vsyncpa [#allocation5 + $0x1], 0 }
   0x2   :  { %9 = vsyncpa [#allocation6], 0 }
   0x3   :  { %11 = vsyncpa [#allocation6 + $0x1], 0  ;;  %s536_s6 = smov 0   ;;  %s538_s7 = smov 0  }
   0x4   :  { %s540_s8 = smov 0   ;;  %s542_s9 = smov 0  }
   0x5   :  { %s544_s10 = smov 0   ;;  %s546_s11 = smov 0  }
   0x6 LB: > { %s329_s12 = sadd.s32 4294967295, %s520_s11   ;;  %s330_s13 = sadd.s32 4294967294, %s520_s11   ;;  %s520_s11 = sphi %s546_s11, %s17_s11   ;;  %s516_s10 = sphi %s544_s10, %s726_s10   ;;  %s512_s9 = sphi %s542_s9, %s725_s9   ;;  %s508_s8 = sphi %s540_s8, %s724_s8   ;;  %s504_s7 = sphi %s538_s7, %s723_s7   ;;  %s500_s6 = sphi %s536_s6, %s722_s6  }
   0x7   : > { %s43_s14 = sadd.s32 1, %s516_s10  ;;  %s56_s15 = sadd.s32 1, %s508_s8 }
   0x8   : > { %p45_p0 = scmp.ge.s32.totalorder %s43_s14, 2  ;;  %p63_p1 = scmp.ne.s32.totalorder %s508_s8, %s504_s7 }
   0x9   : > { %p64_p2 = scmp.eq.s32.totalorder %s520_s11, 0  ;;  %p69_p3 = scmp.ne.s32.totalorder %s504_s7, %s500_s6 }
   0xa   : > { %s728_s14 = smov (%p45_p0, %s43_s14), 0  ;;  %p70_p5 = scmp.eq.s32.totalorder %s329_s12, 0 }
   0xb   : > { %p577_p4 = por %p64_p2, %p63_p1  ;;  %s49_s17 = ssub.s32 %s516_s10, %s728_s14 }
   0xc   : > { %p97_p6 = scmp.eq.s32.totalorder %s329_s12, 1  ;;  %p54_p7 = scmp.eq.s32.totalorder %s49_s17, 0 }
   0xd   : > { %p583_p8 = por %p70_p5, %p69_p3  ;;  %p103_p10 = scmp.eq.s32.totalorder %s330_s13, 1 }
   0xe   : > { %p587_p9 = por %p97_p6, %p63_p1  ;;  %p356_p13 = scmp.lt.s32.totalorder %s520_s11, 2 }
   0xf   : > { %s592_s20 = scalar_select %p54_p7, %s508_s8, %s56_s15  }
  0x10   : > { %s714_s19 = scalar_select %p587_p9, 1, 0 }
  0x11   : > { %p594_p11 = por %p103_p10, %p69_p3  ;;  %s123_s22 = sand.u32 1, %s508_s8  }
  0x12   : > { %s333_s23 = sshll.u32 %s123_s22, 3  ;;  %s343_s24 = sshll.u32 %s516_s10, 7 }
  0x13   : > { %s715_s21 = scalar_select %p594_p11, 1, 0 }
  0x14   : > { %s605_s27 = scalar_lea.hbm %s709_s0, %s343_s24  ;;  %s127_s28 = scalar_lea.vmem [#allocation4], %s333_s23 }
  0x15   : > { %s140_s29 = sshll.u32 %s127_s28, 4  ;;  %p611_p0 = pnand %p356_p13, %p577_p4  ;;  %s607_s29 = int_to_ptr.vmem [resolvable:$true] %s140_s29 }
  0x16   : > { %s124_s2 = scalar_lea.sflag [#allocation5], %s123_s22  ;;  %s408_s3 = scalar_lea.hbm %s605_s27, 128 }
  0x17   : > { %p409_p3 = scmp.ne.s32.totalorder %s605_s27, %s408_s3  ;;  %p410_p5 = pneg %p611_p0 }
  0x18   : > { %s413_s12 = scalar_lea.hbm %s709_s0, 256  ;;  %p414_p4 = scmp.lt.u32.totalorder %s605_s27, %s709_s0 }
  0x19   : > { %p411_p6 = pnand %p410_p5, %p409_p3  ;;  %p415_p10 = scmp.lt.u32.totalorder %s413_s12, %s408_s3 }
  0x1a   : > { %p417_p12 = scmp.lt.u32.totalorder %s408_s3, %s605_s27 }
  0x1b   : > { %p412_p7 = pneg %p411_p6  ;;  %p416_p13 = por %p415_p10, %p414_p4 }
  0x1d   : > { %p418_p1 = por %p417_p12, %p416_p13 }
  0x1f   : > { %p419_p2 = pnand %p418_p1, %p412_p7 }
  0x21   : > { %422 = shalt.err (!%p419_p2)
}
  0x22   : > { %s423_s16 = scalar_lea.vmem %s607_s29, 128  ;;  %s522_s17 = smov [#allocation4]  }
  0x23   : > { %p424_p3 = scmp.ne.s32.totalorder %s607_s29, %s423_s16  ;;  %s428_s22 = sshll.u32 %s522_s17, 4  ;;  %s429_s22 = int_to_ptr.vmem [resolvable:$false] %s428_s22 }
  0x24   : > { %s430_s23 = scalar_lea.vmem %s429_s22, 256  ;;  %p431_p9 = scmp.lt.s32.totalorder %s607_s29, %s429_s22 }
  0x25   : > { %p426_p6 = pnand %p424_p3, %p410_p5  ;;  %p432_p4 = scmp.lt.s32.totalorder %s430_s23, %s423_s16 }
  0x27   : > { %p427_p11 = pneg %p426_p6  ;;  %p433_p10 = por %p432_p4, %p431_p9 }
  0x29   : > { %p434_p12 = pnand %p433_p10, %p427_p11 }
  0x2b   : > { %437 = shalt.err (!%p434_p12)
}
  0x2c   : > { %351 = dma.hbm_to_vmem [thread:$0]  (!%p611_p0), %s605_s27, 128, %s607_s29, %s124_s2  }
  0x2d   : > { %p717_p1 = scmp.lt.s32.totalorder %s520_s11, 3  ;;  %p718_p2 = scmp.ge.s32.totalorder %s520_s11, 1 }
  0x2f   : > { %p146_p5 = pnand %p718_p2, %p717_p1 }
  0x30   : > { %s647_s24 = sand.u32 (!%p146_p5), 1, %s504_s7  }
  0x31   : > { %149 = sbr.rel (%p146_p5) target bundleno = 239 (0xef), region = 24  ;;  %s337_s25 = sshll.u32 (!%p146_p5), %s647_s24, 3 }
  0x32   : > { %s152_s26 = scalar_lea.sflag (!%p146_p5), [#allocation5], %s647_s24  ;;  %s155_s28 = scalar_lea.vmem (!%p146_p5), [#allocation4], %s337_s25 }
  0x38   : > { %491 = dma.done.wait (%p583_p8), %s152_s26, 128  }
  0x39   : > { %493 = vsyncadd (%p583_p8), %s152_s26, 4294967168  ;;  %v523_v0 = vmov -inf   ;;  %v524_v1 = vmov 0.0   ;;  %v182_v2 = vld [vmem:[%s155_s28] sm:$0xf]  ;;  %vm196_vm0 = vcmask 1043456   ;;  %v201_v14 = vlaneseq }
  0x3a   : > { %180 = vst [vmem:[#allocation2] sm:$0xf] %v523_v0  ;;  %181 = vst [vmem:[#allocation3] sm:$0xf] %v524_v1  ;;  %v183_v3 = vld [vmem:[%s155_s28 + $0x4] sm:$0xf] }
  0x3b   : > { %v184_v4 = vmax.f32 %v182_v2, %v183_v3  ;;  %v185_v6 = vadd.f32 %v183_v3, %v182_v2  ;;  %v202_v15 = vand.u32 127, %v201_v14  ;;  %v204_v16 = vshrl.u32 %v201_v14, 7  ;;  %s338_s18 = sshll.u32 %s647_s24, 1  ;;  %s340_s27 = sshll.u32 %s512_s9, 5 }
  0x3c   : > { %vm208_vm1 = vcmask 24576   ;;  %s173_s29 = scalar_lea.vmem [#allocation7], %s338_s18  ;;  %s660_s4 = scalar_lea.hbm %s710_s1, %s340_s27 }
  0x3d   : > { %v205_v17 = vsub.s32 %v202_v15, %v204_v16  ;;  %s237_s30 = sshll.u32 %s173_s29, 4  ;;  %s222_s5 = scalar_lea.sflag [#allocation6], %s647_s24  ;;  %s662_s30 = int_to_ptr.vmem [resolvable:$true] %s237_s30 }
  0x3e   : > { %s438_s12 = scalar_lea.vmem %s662_s30, 32  ;;  %p719_p9 = scmp.ne.s32.totalorder %s714_s19, 0 }
  0x3f   : > { %p439_p8 = scmp.ne.s32.totalorder %s662_s30, %s438_s12  ;;  %s525_s9 = smov [#allocation7]  }
  0x40   : > { %s442_s13 = sshll.u32 %s525_s9, 4  ;;  %s443_s13 = int_to_ptr.vmem [resolvable:$false] %s442_s13 }
  0x41   : > { %v186_v5 = vld [vmem:[#allocation2] sm:$0xf]  ;;  %v189_v7 = vld [vmem:[#allocation3] sm:$0xf]  ;;  %p440_p11 = pnand %p439_p8, %p719_p9  ;;  %s444_s15 = scalar_lea.vmem %s443_s13, 64 }
  0x42   : > { %v187_v8 = vmax.f32 %v186_v5, %v184_v4  ;;  %v190_v9 = vadd.f32 %v189_v7, %v185_v6  ;;  %p445_p7 = scmp.lt.s32.totalorder %s662_s30, %s443_s13  ;;  %p446_p13 = scmp.lt.s32.totalorder %s444_s15, %s438_s12 }
  0x43   : > { %p441_p0 = pneg %p440_p11 }
  0x44   : > { %188 = vst [vmem:[#allocation2] sm:$0xf] %v187_v8  ;;  %191 = vst [vmem:[#allocation3] sm:$0xf] %v190_v9  ;;  %p447_p3 = por %p446_p13, %p445_p7 }
  0x46   : > { %p448_p6 = pnand %p447_p3, %p441_p0 }
  0x4b   : > { %v195_v10 = vld [vmem:[#allocation2] sm:$0xf]  ;;  %v210_v11 = vld [vmem:[#allocation3] sm:$0xf] }
  0x4c   : > { %v197_v12 = vsel %vm196_vm0, %v195_v10, -inf  ;;  %v211_v13 = vsel %vm196_vm0, %v210_v11, 0.0 }
  0x4d   : > { %198 = vmax.xlane.f32.xlu0 %v197_v12 }
  0x51   : > { %212 = vadd.xlane.f32.xlu0 %v211_v13 }
  0xda   : > { %v199_v18 = vpop.xlane.xlu0 %198 }
  0xdb   : > { %v206_v19 = vrot.slane %v199_v18, %v205_v17 }
  0xdd   : > { %209 = vst.msk [vmem:[%s173_s29] sm:$0x1] %vm208_vm1, %v206_v19 }
  0xde   : > { %v213_v20 = vpop.xlane.xlu0 %212 }
  0xdf   : > { %v218_v21 = vrot.slane %v213_v20, %v205_v17 }
  0xe1   : > { %220 = vst.msk [vmem:[%s173_s29 + $0x1] sm:$0x1] %vm208_vm1, %v218_v21 }
  0xe2   : > { %451 = shalt.err (!%p448_p6)
}
  0xe3   : > { %s452_s16 = scalar_lea.hbm %s660_s4, 32  ;;  %s456_s23 = scalar_lea.hbm %s710_s1, 64 }
  0xe4   : > { %p453_p4 = scmp.ne.s32.totalorder %s660_s4, %s452_s16  ;;  %p457_p1 = scmp.lt.u32.totalorder %s660_s4, %s710_s1 }
  0xe5   : > { %p458_p2 = scmp.lt.u32.totalorder %s456_s23, %s452_s16  ;;  %p460_p8 = scmp.lt.u32.totalorder %s452_s16, %s660_s4 }
  0xe6   : > { %p454_p10 = pnand %p453_p4, %p719_p9 }
  0xe7   : > { %p459_p5 = por %p458_p2, %p457_p1 }
  0xe8   : > { %p455_p12 = pneg %p454_p10 }
  0xe9   : > { %p461_p11 = por %p460_p8, %p459_p5 }
  0xeb   : > { %p462_p0 = pnand %p461_p11, %p455_p12 }
  0xed   : > { %465 = shalt.err (!%p462_p0)
}
  0xee   : > { %346 = dma.vmem_to_hbm [thread:$0]  (%p719_p9), %s662_s30, 32, %s660_s4, %s222_s5  }
  0xef PF: > { %s249_s26 = sand.u32 1, %s500_s6   ;;  %p720_p7 = scmp.ne.s32.totalorder %s715_s21, 0 }
  0xf0   : > { %p721_p13 = scmp.ge.s32.totalorder %s520_s11, 2  ;;  %s250_s28 = scalar_lea.sflag [#allocation6], %s249_s26 }
  0xf2   : > { %p353_p3 = pnand %p721_p13, %p720_p7 }
  0xf4   : > { %495 = dma.done.wait (!%p353_p3), %s250_s28, 32  }
  0xf5   : > { %497 = vsyncadd (!%p353_p3), %s250_s28, 4294967264  ;;  %s17_s11 = sadd.s32 1, %s520_s11   ;;  %s722_s6 = smov %s504_s7 }
  0xf6   : > { %p14_p6 = scmp.ge.s32.totalorder %s17_s11, 4   ;;  %s723_s7 = smov %s508_s8 }
  0xf7   : > { %s724_s8 = smov %s592_s20  ;;  %s725_s9 = smov %s516_s10 }
  0xf8   : > { %s726_s10 = smov %s728_s14  ;;  %16 = sbr.rel (!%p14_p6) target bundleno = 6 (0x6), region = 77 }
  0xff   :  { %255 = vsyncpa [#allocation5], 1 }
 0x100   :  { %257 = vsyncpa [#allocation5 + $0x1], 1 }
 0x101   :  { %258 = vsyncpa [#allocation6], 1 }
 0x102   :  { %260 = vsyncpa [#allocation6 + $0x1], 1 }

</bundles_post_ra>
